<compile_context>
chip_gen: v7x
topology: tpu7x:2x2x1
jax: 0.10.0
libtpu: 0.0.40
codegen_flags: <defaults>
</compile_context>

<pallas_src>
import jax
import jax.numpy as jnp
from jax import lax
from jax.experimental import pallas as pl
from jax.experimental.pallas import tpu as pltpu


OUT_PAD = 128      # lane-dense output slab width (unmasked 128-lane stores)
LN_EPS = 1e-6


def _round_up(v, m):
    return ((v + m - 1) // m) * m


def _choose_tile_samples(batch, n_pad):
    """Samples per grid step.  Targets ~2048 flattened rows per step and keeps
    at least two grid blocks for larger batches (v7x megacore)."""
    b8 = _round_up(max(batch, 1), 8)
    ts = max(8, (2048 // max(n_pad, 1)) // 8 * 8)
    if b8 >= 16:
        ts = min(ts, _round_up(b8 // 2, 8))   # >= 2 blocks -> both v7x TCs busy
    return max(8, min(ts, b8))


# ----------------------------------------------------------------------------
# Pallas kernel: fused Actor + Critic forward for TS samples (= TS*N_pad rows)
# ----------------------------------------------------------------------------
def _make_kernel(ts, n_pad, f_pad, h2, embed, r_wp, mxu_dtype):
    inv_e = 1.0 / float(embed)

    def kernel(x_ref, wslab_ref, cslab_ref, out_ref):
        # ---- unpack the packed constant slabs (tiny, once per grid step) ----
        cs = cslab_ref[...]                               # (R, 128) f32
        rs = cs[0:h2, 0:2]          # effective decoder cols (lane0 actor / lane1 critic)
        rm = cs[0:h2, 2:4]          # mean columns (1/E in each network's rows)
        rq = cs[0:h2, 4:6]          # sum-of-squares columns (1s in each network's rows)
        b1 = cs[h2:h2 + 1, 0:h2]
        b2 = cs[h2 + 1:h2 + 2, 0:h2]
        b3 = cs[h2 + 2:h2 + 3, 0:h2]
        swd_sum = cs[h2 + 3:h2 + 4, 0:2]                  # sum of effective decoder weights
        bout = cs[h2 + 4:h2 + 5, :]                       # fused output bias (1, 128)
        wpa = cs[r_wp:r_wp + n_pad, :]                    # actor proj slab  (N_pad, 128)
        wpc = cs[r_wp + n_pad:r_wp + 2 * n_pad, :]        # critic proj slab (N_pad, 128)

        w1 = wslab_ref[0:f_pad, :]                        # (F_pad, 2E)   [actor | critic]
        w2 = wslab_ref[f_pad:f_pad + h2, :]               # (2E, 2E)      blockdiag
        w3 = wslab_ref[f_pad + h2:f_pad + 2 * h2, :]      # (2E, 2E)      blockdiag

        # ---- fused actor+critic backbone on the combined 2E-wide activation ----
        x = x_ref[...]                                    # (TBR, F_pad)  mxu_dtype
        h = jnp.dot(x, w1, preferred_element_type=jnp.float32) + b1
        h = jnp.tanh(h).astype(mxu_dtype)
        h = jnp.dot(h, w2, preferred_element_type=jnp.float32) + b2
        h = jnp.tanh(h).astype(mxu_dtype)
        h3 = jnp.dot(h, w3, preferred_element_type=jnp.float32) + b3    # (TBR, 2E) f32

        # ---- LayerNorm stats + decoder dot as tiny MXU matmuls (no XLU reduces) ----
        swd = jnp.dot(h3, rs, preferred_element_type=jnp.float32)       # (TBR, 2)
        mu = jnp.dot(h3, rm, preferred_element_type=jnp.float32)        # (TBR, 2)
        ss = jnp.dot(h3 * h3, rq, preferred_element_type=jnp.float32)   # (TBR, 2)
        var = ss * inv_e - mu * mu
        rstd = lax.rsqrt(var + LN_EPS)
        dec = rstd * (swd - mu * swd_sum)          # (TBR, 2): [dec_actor, dec_critic]

        # ---- proj Linear(N -> out): linear-cost per-sample reduction ----
        dec3 = dec.reshape(ts, n_pad, 2)           # layout-friendly (N_pad % 8 == 0)
        da = dec3[:, :, 0:1]
        dc = dec3[:, :, 1:2]
        contrib = da * wpa + dc * wpc              # (TS, N_pad, 128)
        # TODO(synk): on v5e the (B,128) f32 output is 32x larger than the 16
        # useful bytes/sample; an 8-samples-per-row packed output would cut
        # writeback but needs a sublane->lane repack, skipped here.
        out_ref[...] = jnp.sum(contrib, axis=1) + bout      # (TS, 128) lane-dense store

    return kernel


# ----------------------------------------------------------------------------
# Constant preparation (hoisted out of the rollout loop)
# ----------------------------------------------------------------------------
def prepare_ppo_params(actor_p, critic_p, *, action_dim=3, mxu_dtype=jnp.bfloat16):
    """Fuse and pack all network constants once.

    Exact f32 algebraic fusions: encoder->fc1 and fc2->fc1 Linear pairs are
    pre-multiplied; LayerNorm affine + decoder Linear(E->1) fold into an
    effective decoder vector; decoder/LN scalar bias folds into the proj bias.
    """
    feat, embed = actor_p["wenc"].shape
    n_seq, _ = actor_p["wproj"].shape
    f_pad = _round_up(feat, 16)         # bf16 sublane-pair friendly slab offsets
    n_pad = _round_up(n_seq, 8)
    h2 = 2 * embed
    assert action_dim + 1 <= OUT_PAD

    def fuse(p):
        w1 = p["wenc"] @ p["w1a"]
        b1 = p["benc"] @ p["w1a"] + p["b1a"]
        w2 = p["w2a"] @ p["w1b"]
        b2 = p["b2a"] @ p["w1b"] + p["b1b"]
        w3 = p["w2b"]
        b3 = p["b2b"]
        wde = (p["lnw"] * p["wdec"]).reshape(embed)                 # LN weight * decoder
        bde = jnp.sum(p["lnb"] * p["wdec"]) + p["bdec"][0, 0]       # scalar
        return w1, b1, w2, b2, w3, b3, wde, bde

    wa1, ba1, wa2, ba2, wa3, ba3, wde_a, bde_a = fuse(actor_p)
    wc1, bc1, wc2, bc2, wc3, bc3, wde_c, bde_c = fuse(critic_p)

    # ---- weight slab (mxu_dtype): [W1c ; W2c ; W3c], combined width 2E ----
    w1c = jnp.zeros((f_pad, h2), jnp.float32)
    w1c = w1c.at[:feat, :embed].set(wa1).at[:feat, embed:].set(wc1)
    w2c = jnp.zeros((h2, h2), jnp.float32)
    w2c = w2c.at[:embed, :embed].set(wa2).at[embed:, embed:].set(wc2)
    w3c = jnp.zeros((h2, h2), jnp.float32)
    w3c = w3c.at[:embed, :embed].set(wa3).at[embed:, embed:].set(wc3)
    wslab = jnp.concatenate([w1c, w2c, w3c], axis=0).astype(mxu_dtype)

    # ---- f32 const slab: reduction matrices, biases, proj slabs, output bias ----
    r_wp = _round_up(h2 + 5, 8)
    rows = _round_up(r_wp + 2 * n_pad, 8)
    cs = jnp.zeros((rows, OUT_PAD), jnp.float32)
    cs = cs.at[:embed, 0].set(wde_a).at[embed:h2, 1].set(wde_c)              # decoder dot
    cs = cs.at[:embed, 2].set(1.0 / embed).at[embed:h2, 3].set(1.0 / embed)  # mean
    cs = cs.at[:embed, 4].set(1.0).at[embed:h2, 5].set(1.0)                  # sum of squares
    cs = cs.at[h2, :embed].set(ba1[0]).at[h2, embed:h2].set(bc1[0])
    cs = cs.at[h2 + 1, :embed].set(ba2[0]).at[h2 + 1, embed:h2].set(bc2[0])
    cs = cs.at[h2 + 2, :embed].set(ba3[0]).at[h2 + 2, embed:h2].set(bc3[0])
    cs = cs.at[h2 + 3, 0].set(jnp.sum(wde_a)).at[h2 + 3, 1].set(jnp.sum(wde_c))
    bout_a = actor_p["bproj"][0] + bde_a * jnp.sum(actor_p["wproj"], axis=0)
    bout_c = critic_p["bproj"][0, 0] + bde_c * jnp.sum(critic_p["wproj"][:, 0])
    cs = cs.at[h2 + 4, :action_dim].set(bout_a).at[h2 + 4, action_dim].set(bout_c)
    cs = cs.at[r_wp:r_wp + n_seq, :action_dim].set(actor_p["wproj"])
    cs = cs.at[r_wp + n_pad:r_wp + n_pad + n_seq, action_dim].set(critic_p["wproj"][:, 0])

    return dict(wslab=wslab, cslab=cs, feat=feat, f_pad=f_pad, embed=embed, h2=h2,
                n_seq=n_seq, n_pad=n_pad, r_wp=r_wp, action_dim=action_dim,
                mxu_dtype=mxu_dtype)


# ----------------------------------------------------------------------------
# Forward wrapper
# ----------------------------------------------------------------------------
def ppo_forward(x, prep):
    """Fused Actor+Critic forward.  x: (B, N, F) -> (logits (B, A), value (B,))."""
    batch, n_seq, feat = x.shape
    assert n_seq == prep["n_seq"] and feat == prep["feat"]
    n_pad, f_pad, h2 = prep["n_pad"], prep["f_pad"], prep["h2"]
    ts = _choose_tile_samples(batch, n_pad)
    b_pad = _round_up(batch, ts)
    tbr = ts * n_pad
    n_blocks = b_pad // ts

    if (b_pad, n_pad, f_pad) != (batch, n_seq, feat):
        x = jnp.pad(x, ((0, b_pad - batch), (0, n_pad - n_seq), (0, f_pad - feat)))
    x_flat = x.reshape(b_pad * n_pad, f_pad).astype(prep["mxu_dtype"])

    kernel = _make_kernel(ts, n_pad, f_pad, h2, prep["embed"], prep["r_wp"],
                          prep["mxu_dtype"])

    out = pl.pallas_call(
        kernel,
        out_shape=jax.ShapeDtypeStruct((b_pad, OUT_PAD), jnp.float32),
        grid_spec=pltpu.PrefetchScalarGridSpec(
            num_scalar_prefetch=0,
            grid=(n_blocks,),
            in_specs=[
                pl.BlockSpec((tbr, f_pad), lambda i: (i, 0)),
                pl.BlockSpec(prep["wslab"].shape, lambda i: (0, 0)),
                pl.BlockSpec(prep["cslab"].shape, lambda i: (0, 0)),
            ],
            out_specs=pl.BlockSpec((ts, OUT_PAD), lambda i: (i, 0)),
        ),
        compiler_params=pltpu.CompilerParams(
            dimension_semantics=("parallel",),
            vmem_limit_bytes=48 * 1024 * 1024,
        ),
    )(x_flat, prep["wslab"], prep["cslab"])

    act_dim = prep["action_dim"]
    return out[:batch, :act_dim], out[:batch, act_dim]


# ----------------------------------------------------------------------------
# Deterministic parameter init (xavier_uniform weights, zero biases, LN w=1 b=0)
# ----------------------------------------------------------------------------
def xavier_uniform(key, fan_in, fan_out):
    bound = (6.0 / (fan_in + fan_out)) ** 0.5
    return jax.random.uniform(key, (fan_in, fan_out), jnp.float32, -bound, bound)


def init_network_params(key, seq_len, feat, embed, out_dim):
    ks = jax.random.split(key, 7)
    p = {}
    p["wenc"] = xavier_uniform(ks[0], feat, embed)
    p["benc"] = jnp.zeros((1, embed), jnp.float32)
    p["w1a"] = xavier_uniform(ks[1], embed, embed)
    p["b1a"] = jnp.zeros((1, embed), jnp.float32)
    p["w2a"] = xavier_uniform(ks[2], embed, embed)
    p["b2a"] = jnp.zeros((1, embed), jnp.float32)
    p["w1b"] = xavier_uniform(ks[3], embed, embed)
    p["b1b"] = jnp.zeros((1, embed), jnp.float32)
    p["w2b"] = xavier_uniform(ks[4], embed, embed)
    p["b2b"] = jnp.zeros((1, embed), jnp.float32)
    p["lnw"] = jnp.ones((1, embed), jnp.float32)
    p["lnb"] = jnp.zeros((1, embed), jnp.float32)
    p["wdec"] = xavier_uniform(ks[5], embed, 1).reshape(1, embed)   # row form
    p["bdec"] = jnp.zeros((1, 1), jnp.float32)
    p["wproj"] = xavier_uniform(ks[6], seq_len, out_dim)
    p["bproj"] = jnp.zeros((1, out_dim), jnp.float32)
    return p


# ----------------------------------------------------------------------------
# Pure-JAX reference of the ORIGINAL (unfused) forward, for correctness check
# ----------------------------------------------------------------------------
def ref_forward(x, p):
    h = x @ p["wenc"] + p["benc"]
    h = jnp.tanh(h @ p["w1a"] + p["b1a"]) @ p["w2a"] + p["b2a"]
    h = jnp.tanh(h @ p["w1b"] + p["b1b"]) @ p["w2b"] + p["b2b"]
    mu = jnp.mean(h, axis=-1, keepdims=True)
    var = jnp.mean((h - mu) ** 2, axis=-1, keepdims=True)
    h = (h - mu) / jnp.sqrt(var + LN_EPS) * p["lnw"] + p["lnb"]
    dec = jnp.sum(h * p["wdec"][None], axis=-1) + p["bdec"][0, 0]   # (B, N)
    return dec @ p["wproj"] + p["bproj"]                            # (B, out_dim)


# ----------------------------------------------------------------------------
# PPO.get_action_and_value equivalent (glue in plain JAX)
# ----------------------------------------------------------------------------
def get_action_and_value(x, prep, key):
    logits, value = ppo_forward(x, prep)                            # one fused kernel

    log_z = jax.scipy.special.logsumexp(logits, axis=-1, keepdims=True)
    log_p = logits - log_z
    # TODO(synk): PyTorch Categorical.sample() uses multinomial RNG; we use
    # jax.random.categorical (Gumbel) — distributionally equivalent, different stream.
    action = jax.random.categorical(key, logits)                    # (B,)
    log_prob = jnp.take_along_axis(log_p, action[:, None], axis=-1)[:, 0]
    entropy = -jnp.sum(jnp.exp(log_p) * log_p, axis=-1)
    return action, log_prob, entropy, value


if __name__ == "__main__":
    # Small shapes consistent with the module: input_size=(N, F), embed_dim=E
    B, N, F, E = 2, 8, 32, 32
    ACTION_DIM = 3

    root = jax.random.PRNGKey(0)
    k_x, k_actor, k_critic, k_sample = jax.random.split(root, 4)

    x = jax.random.normal(k_x, (B, N, F), jnp.float32)
    actor_params = init_network_params(k_actor, N, F, E, ACTION_DIM)
    critic_params = init_network_params(k_critic, N, F, E, 1)

    logits_ref = ref_forward(x, actor_params)
    value_ref = ref_forward(x, critic_params)[:, 0]

    # 1) exact-structure check: f32 MXU path vs unfused pure-JAX reference
    prep_f32 = prepare_ppo_params(actor_params, critic_params,
                                  action_dim=ACTION_DIM, mxu_dtype=jnp.float32)
    logits32, value32 = ppo_forward(x, prep_f32)
    err_l = float(jnp.max(jnp.abs(logits32 - logits_ref)))
    err_v = float(jnp.max(jnp.abs(value32 - value_ref)))
    assert jnp.allclose(logits32, logits_ref, atol=5e-4, rtol=5e-4), err_l
    assert jnp.allclose(value32, value_ref, atol=5e-4, rtol=5e-4), err_v

    # 2) performance configuration: bf16 MXU inputs (f32 accumulate), looser tol
    prep = prepare_ppo_params(actor_params, critic_params, action_dim=ACTION_DIM)
    action, log_prob, entropy, value = get_action_and_value(x, prep, k_sample)
    jax.block_until_ready((action, log_prob, entropy, value))

    logits_bf, value_bf = ppo_forward(x, prep)
    err_lb = float(jnp.max(jnp.abs(logits_bf - logits_ref)))
    err_vb = float(jnp.max(jnp.abs(value_bf - value_ref)))
    assert jnp.allclose(logits_bf, logits_ref, atol=1e-1, rtol=1e-1), err_lb
    assert jnp.allclose(value_bf, value_ref, atol=1e-1, rtol=1e-1), err_vb

    assert action.shape == (B,) and log_prob.shape == (B,)
    assert entropy.shape == (B,) and value.shape == (B,)

    print("KERNEL_OK")
</pallas_src>

<mosaic_0001>
module attributes {stable_mosaic.version = 11 : i64} {
  func.func @kernel(%arg0: i32, %arg1: memref<64x32xf32, #tpu.memory_space<vmem>>, %arg2: memref<160x64xf32, #tpu.memory_space<vmem>>, %arg3: memref<88x128xf32, #tpu.memory_space<vmem>>, %arg4: memref<8x128xf32, #tpu.memory_space<vmem>>) attributes {dimension_semantics = [#tpu.dimension_semantics<parallel>], iteration_bounds = array<i64: 1>, scalar_prefetch = 0 : i64, scratch_operands = 0 : i64, tpu.core_type = #tpu.core_type<tc>, window_params = [{transform_indices = @transform_0, window_bounds = array<i64: 64, 32>}, {pipeline_mode = #tpu.pipeline_mode<synchronous>, transform_indices = @transform_1, window_bounds = array<i64: 160, 64>}, {pipeline_mode = #tpu.pipeline_mode<synchronous>, transform_indices = @transform_2, window_bounds = array<i64: 88, 128>}, {transform_indices = @transform_3, window_bounds = array<i64: 8, 128>}]} {
    %c0 = arith.constant 0 : index
    %c0_0 = arith.constant 0 : index
    %0 = vector.load %arg3[%c0, %c0_0] : memref<88x128xf32, #tpu.memory_space<vmem>>, vector<88x128xf32>
    %1 = vector.extract_strided_slice %0 {offsets = [0, 0], sizes = [64, 2], strides = [1, 1]} : vector<88x128xf32> to vector<64x2xf32>
    %2 = vector.extract_strided_slice %0 {offsets = [0, 2], sizes = [64, 2], strides = [1, 1]} : vector<88x128xf32> to vector<64x2xf32>
    %3 = vector.extract_strided_slice %0 {offsets = [0, 4], sizes = [64, 2], strides = [1, 1]} : vector<88x128xf32> to vector<64x2xf32>
    %4 = vector.extract_strided_slice %0 {offsets = [64, 0], sizes = [1, 64], strides = [1, 1]} : vector<88x128xf32> to vector<1x64xf32>
    %5 = vector.extract_strided_slice %0 {offsets = [65, 0], sizes = [1, 64], strides = [1, 1]} : vector<88x128xf32> to vector<1x64xf32>
    %6 = vector.extract_strided_slice %0 {offsets = [66, 0], sizes = [1, 64], strides = [1, 1]} : vector<88x128xf32> to vector<1x64xf32>
    %7 = vector.extract_strided_slice %0 {offsets = [67, 0], sizes = [1, 2], strides = [1, 1]} : vector<88x128xf32> to vector<1x2xf32>
    %8 = vector.extract_strided_slice %0 {offsets = [68, 0], sizes = [1, 128], strides = [1, 1]} : vector<88x128xf32> to vector<1x128xf32>
    %9 = vector.extract_strided_slice %0 {offsets = [72, 0], sizes = [8, 128], strides = [1, 1]} : vector<88x128xf32> to vector<8x128xf32>
    %10 = vector.extract_strided_slice %0 {offsets = [80, 0], sizes = [8, 128], strides = [1, 1]} : vector<88x128xf32> to vector<8x128xf32>
    %c0_1 = arith.constant 0 : index
    %c0_2 = arith.constant 0 : index
    %11 = vector.load %arg2[%c0_1, %c0_2] : memref<160x64xf32, #tpu.memory_space<vmem>>, vector<32x64xf32>
    %c32 = arith.constant 32 : index
    %c0_3 = arith.constant 0 : index
    %12 = vector.load %arg2[%c32, %c0_3] : memref<160x64xf32, #tpu.memory_space<vmem>>, vector<64x64xf32>
    %c96 = arith.constant 96 : index
    %c0_4 = arith.constant 0 : index
    %13 = vector.load %arg2[%c96, %c0_4] : memref<160x64xf32, #tpu.memory_space<vmem>>, vector<64x64xf32>
    %c0_5 = arith.constant 0 : index
    %c0_6 = arith.constant 0 : index
    %14 = vector.load %arg1[%c0_5, %c0_6] : memref<64x32xf32, #tpu.memory_space<vmem>>, vector<64x32xf32>
    %cst = arith.constant dense<0.000000e+00> : vector<64x64xf32>
    %15 = tpu.matmul %14, %11, %cst {dimension_numbers = #tpu.dot_dimension_numbers<[1], [0], [0], [1], [0, 0, 1, 1], [], []>} : vector<64x32xf32>, vector<32x64xf32>, vector<64x64xf32> -> vector<64x64xf32>
    %16 = vector.broadcast %4 : vector<1x64xf32> to vector<64x64xf32>
    %17 = arith.addf %15, %16 : vector<64x64xf32>
    %18 = math.tanh %17 : vector<64x64xf32>
    %cst_7 = arith.constant dense<0.000000e+00> : vector<64x64xf32>
    %19 = tpu.matmul %18, %12, %cst_7 {dimension_numbers = #tpu.dot_dimension_numbers<[1], [0], [0], [1], [0, 0, 1, 1], [], []>} : vector<64x64xf32>, vector<64x64xf32>, vector<64x64xf32> -> vector<64x64xf32>
    %20 = vector.broadcast %5 : vector<1x64xf32> to vector<64x64xf32>
    %21 = arith.addf %19, %20 : vector<64x64xf32>
    %22 = math.tanh %21 : vector<64x64xf32>
    %cst_8 = arith.constant dense<0.000000e+00> : vector<64x64xf32>
    %23 = tpu.matmul %22, %13, %cst_8 {dimension_numbers = #tpu.dot_dimension_numbers<[1], [0], [0], [1], [0, 0, 1, 1], [], []>} : vector<64x64xf32>, vector<64x64xf32>, vector<64x64xf32> -> vector<64x64xf32>
    %24 = vector.broadcast %6 : vector<1x64xf32> to vector<64x64xf32>
    %25 = arith.addf %23, %24 : vector<64x64xf32>
    %cst_9 = arith.constant dense<0.000000e+00> : vector<64x2xf32>
    %26 = tpu.matmul %25, %1, %cst_9 {dimension_numbers = #tpu.dot_dimension_numbers<[1], [0], [0], [1], [0, 0, 1, 1], [], []>} : vector<64x64xf32>, vector<64x2xf32>, vector<64x2xf32> -> vector<64x2xf32>
    %cst_10 = arith.constant dense<0.000000e+00> : vector<64x2xf32>
    %27 = tpu.matmul %25, %2, %cst_10 {dimension_numbers = #tpu.dot_dimension_numbers<[1], [0], [0], [1], [0, 0, 1, 1], [], []>} : vector<64x64xf32>, vector<64x2xf32>, vector<64x2xf32> -> vector<64x2xf32>
    %28 = arith.mulf %25, %25 : vector<64x64xf32>
    %cst_11 = arith.constant dense<0.000000e+00> : vector<64x2xf32>
    %29 = tpu.matmul %28, %3, %cst_11 {dimension_numbers = #tpu.dot_dimension_numbers<[1], [0], [0], [1], [0, 0, 1, 1], [], []>} : vector<64x64xf32>, vector<64x2xf32>, vector<64x2xf32> -> vector<64x2xf32>
    %cst_12 = arith.constant 3.125000e-02 : f32
    %30 = vector.broadcast %cst_12 : f32 to vector<64x2xf32>
    %31 = arith.mulf %29, %30 : vector<64x2xf32>
    %32 = arith.mulf %27, %27 : vector<64x2xf32>
    %33 = arith.subf %31, %32 : vector<64x2xf32>
    %cst_13 = arith.constant 9.99999997E-7 : f32
    %34 = vector.broadcast %cst_13 : f32 to vector<64x2xf32>
    %35 = arith.addf %33, %34 : vector<64x2xf32>
    %36 = math.rsqrt %35 : vector<64x2xf32>
    %37 = vector.broadcast %7 : vector<1x2xf32> to vector<64x2xf32>
    %38 = arith.mulf %27, %37 : vector<64x2xf32>
    %39 = arith.subf %26, %38 : vector<64x2xf32>
    %40 = arith.mulf %36, %39 : vector<64x2xf32>
    %41 = vector.shape_cast %40 : vector<64x2xf32> to vector<8x8x2xf32>
    %42 = vector.extract_strided_slice %41 {offsets = [0, 0, 0], sizes = [8, 8, 1], strides = [1, 1, 1]} : vector<8x8x2xf32> to vector<8x8x1xf32>
    %43 = vector.extract_strided_slice %41 {offsets = [0, 0, 1], sizes = [8, 8, 1], strides = [1, 1, 1]} : vector<8x8x2xf32> to vector<8x8x1xf32>
    %44 = vector.shape_cast %9 : vector<8x128xf32> to vector<1x8x128xf32>
    %45 = vector.broadcast %42 : vector<8x8x1xf32> to vector<8x8x128xf32>
    %46 = vector.broadcast %44 : vector<1x8x128xf32> to vector<8x8x128xf32>
    %47 = arith.mulf %45, %46 : vector<8x8x128xf32>
    %48 = vector.shape_cast %10 : vector<8x128xf32> to vector<1x8x128xf32>
    %49 = vector.broadcast %43 : vector<8x8x1xf32> to vector<8x8x128xf32>
    %50 = vector.broadcast %48 : vector<1x8x128xf32> to vector<8x8x128xf32>
    %51 = arith.mulf %49, %50 : vector<8x8x128xf32>
    %52 = arith.addf %47, %51 : vector<8x8x128xf32>
    %cst_14 = arith.constant dense<0.000000e+00> : vector<8x128xf32>
    %53 = vector.multi_reduction <add>, %52, %cst_14 [1] : vector<8x8x128xf32> to vector<8x128xf32>
    %54 = vector.broadcast %8 : vector<1x128xf32> to vector<8x128xf32>
    %55 = arith.addf %53, %54 : vector<8x128xf32>
    %c0_15 = arith.constant 0 : index
    %c0_16 = arith.constant 0 : index
    %56 = vector.load %arg4[%c0_15, %c0_16] : memref<8x128xf32, #tpu.memory_space<vmem>>, vector<8x128xf32>
    tpu.vector_store %arg4[%c0_15, %c0_16], %55 {strides = array<i32>} : memref<8x128xf32, #tpu.memory_space<vmem>>, vector<8x128xf32>,
    return
  }
  func.func @transform_0(%arg0: i32) -> (i32, i32) {
    %c0_i32 = arith.constant 0 : i32
    %c0_i32_0 = arith.constant 0 : i32
    return %arg0, %c0_i32 : i32, i32
  }
  func.func @transform_1(%arg0: i32) -> (i32, i32) {
    %c0_i32 = arith.constant 0 : i32
    %c0_i32_0 = arith.constant 0 : i32
    %c0_i32_1 = arith.constant 0 : i32
    return %c0_i32, %c0_i32_0 : i32, i32
  }
  func.func @transform_2(%arg0: i32) -> (i32, i32) {
    %c0_i32 = arith.constant 0 : i32
    %c0_i32_0 = arith.constant 0 : i32
    %c0_i32_1 = arith.constant 0 : i32
    return %c0_i32, %c0_i32_0 : i32, i32
  }
  func.func @transform_3(%arg0: i32) -> (i32, i32) {
    %c0_i32 = arith.constant 0 : i32
    %c0_i32_0 = arith.constant 0 : i32
    return %arg0, %c0_i32 : i32, i32
  }
}

</mosaic_0001>

<bundles_post_ra>
// kernel: tpu_custom_call.1
= control target key start
LH: loop header
LB: loop body
LE: loop exit
PB: predicated region body
PF: predicated region fallthrough
CT: control target
= control target key end

     0   :  { %vm58_vm0 = vcmask 261120   ;;  %s2018_s0 = inlined_call_operand.vmem [shape: f32[64,32], index: 0, kind: input, shape index: {}]   ;;  %s2019_s1 = inlined_call_operand.vmem [shape: f32[160,64], index: 1, kind: input, shape index: {}]   ;;  %s2020_s2 = inlined_call_operand.vmem [shape: f32[88,128], index: 2, kind: input, shape index: {}]   ;;  %s2021_s3 = inlined_call_operand.hbm [shape: f32[8,128], index: 3, kind: output, shape index: {}]  }
   0x1   :  { %v26_v0 = vld [vmem:[%s2019_s1] sm:$0xff]  ;;  %v27_v1 = vld [vmem:[%s2019_s1 + $0x8] sm:$0xff]  ;;  %v28_v2 = vld [vmem:[%s2019_s1 + $0x10] sm:$0xff] }
   0x2   :  { %v1467_v3 = vpack.c.bf16 %v27_v1, %v26_v0  ;;  %v29_v4 = vld [vmem:[%s2019_s1 + $0x18] sm:$0xff]  ;;  %v46_v5 = vld [vmem:[%s2018_s0] sm:$0xff] }
   0x3   :  { %v1471_v6 = vpack.c.bf16 %v29_v4, %v28_v2  ;;  %1315 = vmatprep.mubr.msk.f32.mxu0 %vm58_vm0, %v46_v5 }
   0x4   :  { %1468 = vmatprep.subr.bf16.mxu0 %v1467_v3 }
   0x5   :  { %1470 = vmatpush3.bf16.msra.mxu0 %v1467_v3 }
   0x6   :  { %8 = vsyncpa [#allocation3], 0  ;;  %1472 = vmatprep.subr.bf16.mxu0 %v1471_v6  ;;  %v47_v7 = vld [vmem:[%s2018_s0 + $0x8] sm:$0xff]  ;;  %v48_v8 = vld [vmem:[%s2018_s0 + $0x10] sm:$0xff]  ;;  %v54_v29 = vlaneseq  ;;  %vm200_vm1 = vcmask 523264   ;;  %s1691_s29 = smov 126  }
   0x7   :  { %v49_v9 = vld [vmem:[%s2018_s0 + $0x18] sm:$0xff]  ;;  %v50_v10 = vld [vmem:[%s2018_s0 + $0x20] sm:$0xff]  ;;  %v51_v11 = vld [vmem:[%s2018_s0 + $0x28] sm:$0xff]  ;;  %s1692_s30 = smov 124   ;;  %vm1131_vm2 = vcmask 1041409   ;;  %vm1134_vm3 = vcmask 1042434  }
   0x8   :  { %v52_v12 = vld [vmem:[%s2018_s0 + $0x30] sm:$0xff]  ;;  %v53_v13 = vld [vmem:[%s2018_s0 + $0x38] sm:$0xff]  ;;  %v30_v14 = vld [vmem:[%s2019_s1 + $0x20] sm:$0xff]  ;;  %v1790_v30 = vshrl.u32 %v54_v29, 7  ;;  %vm1137_vm4 = vcmask 1043459   ;;  %vm1140_vm5 = vcmask 1044484  }
   0x9   :  { %1474 = vmatpush3.bf16.msra.mxu0 %v1471_v6  ;;  %v31_v15 = vld [vmem:[%s2019_s1 + $0x28] sm:$0xff]  ;;  %v32_v17 = vld [vmem:[%s2019_s1 + $0x30] sm:$0xff]  ;;  %v33_v18 = vld [vmem:[%s2019_s1 + $0x38] sm:$0xff]  ;;  %vm1143_vm6 = vcmask 1045509   ;;  %vm1146_vm7 = vcmask 1046534   ;;  %vm1149_vm8 = vcmask 1047559  }
   0xa   :  { %v1475_v16 = vpack.c.bf16 %v31_v15, %v30_v14  ;;  %v1479_v19 = vpack.c.bf16 %v33_v18, %v32_v17  ;;  %v34_v20 = vld [vmem:[%s2019_s1 + $0x40] sm:$0xff]  ;;  %v35_v21 = vld [vmem:[%s2019_s1 + $0x48] sm:$0xff]  ;;  %v36_v23 = vld [vmem:[%s2019_s1 + $0x50] sm:$0xff]  ;;  %v56_v31 = vsub.s32 0, %v1790_v30  ;;  %v198_v18 = vsub.s32 1, %v1790_v30 }
   0xb   :  { %v1483_v22 = vpack.c.bf16 %v35_v21, %v34_v20  ;;  %v37_v24 = vld [vmem:[%s2019_s1 + $0x58] sm:$0xff]  ;;  %v38_v26 = vld [vmem:[%s2019_s1 + $0x60] sm:$0xff]  ;;  %v39_v27 = vld [vmem:[%s2019_s1 + $0x68] sm:$0xff] }
   0xc   :  { %1316 = vmatmul.mubr.msk.f32.vlgmr.msra.gmra.mrb[0].mxu0 %vm58_vm0, %v47_v7  ;;  %1476 = vmatprep.subr.bf16.mxu1 %v1475_v16  ;;  %v1487_v25 = vpack.c.bf16 %v37_v24, %v36_v23  ;;  %v1491_v28 = vpack.c.bf16 %v39_v27, %v38_v26  ;;  %v1796_v32 = vld [vmem:[%s2020_s2 + $0x40] sm:$0xff]  ;;  %v40_v58 = vld [vmem:[%s2019_s1 + $0x70] sm:$0xff]  ;;  %v41_v59 = vld [vmem:[%s2019_s1 + $0x78] sm:$0xff] }
   0xd   :  { %1318 = vmatprep.mubr.msk.f32.mxu0 %vm58_vm0, %v48_v8  ;;  %1478 = vmatpush3.bf16.msra.mxu1 %v1475_v16  ;;  %v57_v33 = vrot.slane %v1796_v32, %v56_v31  ;;  %v1495_v60 = vpack.c.bf16 %v41_v59, %v40_v58  ;;  %v42_v61 = vld [vmem:[%s2019_s1 + $0x80] sm:$0xff]  ;;  %v43_v62 = vld [vmem:[%s2019_s1 + $0x88] sm:$0xff]  ;;  %v44_v0 = vld [vmem:[%s2019_s1 + $0x90] sm:$0xff] }
   0xe   :  { %1480 = vmatprep.subr.bf16.mxu1 %v1479_v19  ;;  %1492 = vmatprep.subr.bf16.mxu0 %v1491_v28  ;;  %v1499_v63 = vpack.c.bf16 %v43_v62, %v42_v61  ;;  %v45_v1 = vld [vmem:[%s2019_s1 + $0x98] sm:$0xff]  ;;  %v15_v3 = vld [vmem:[%s2020_s2] sm:$0xff]  ;;  %v16_v4 = vld [vmem:[%s2020_s2 + $0x8] sm:$0xff] }
   0xf   :  { %1494 = vmatpush3.bf16.msra.mxu0 %v1491_v28  ;;  %v1503_v2 = vpack.c.bf16 %v45_v1, %v44_v0  ;;  %v17_v5 = vld [vmem:[%s2020_s2 + $0x10] sm:$0xff]  ;;  %v1568_v6 = vpack.i.bf16 %v16_v4, %v15_v3  ;;  %v18_v7 = vld [vmem:[%s2020_s2 + $0x18] sm:$0xff]  ;;  %v19_v8 = vld [vmem:[%s2020_s2 + $0x20] sm:$0xff] }
  0x10   :  { %1319 = vmatmul.mubr.msk.f32.gmra.mrb[2].mxu0 %vm58_vm0, %v49_v9  ;;  %1496 = vmatprep.subr.bf16.mxu0 %v1495_v60  ;;  %v20_v9 = vld [vmem:[%s2020_s2 + $0x28] sm:$0xff]  ;;  %v1573_v14 = vpack.i.bf16 %v18_v7, %v17_v5  ;;  %v1511_v15 = vpack.c.bf16 %v18_v7, %v17_v5 }
  0x11   :  { %1321 = vmatprep.mubr.msk.f32.mxu0 %vm58_vm0, %v50_v10  ;;  %1482 = vmatpush3.bf16.msra.mxu1 %v1479_v19  ;;  %v1507_v10 = vpack.c.bf16 %v16_v4, %v15_v3  ;;  %v1515_v17 = vpack.c.bf16 %v20_v9, %v19_v8  ;;  %v199_v19 = vrot.slane %v1796_v32, %v198_v18  ;;  %v340_v3 = vsub.s32 2, %v1790_v30 }
  0x12   :  { %1484 = vmatprep.subr.bf16.mxu1 %v1483_v22  ;;  %1569 = vrot.lane.b32.xlu0 %v1568_v6, %s1691_s29 }
  0x13   :  { %1498 = vmatpush3.bf16.msra.mxu0 %v1495_v60  ;;  %v341_v5 = vrot.slane %v1796_v32, %v340_v3 }
  0x14   :  { %1322 = vmatmul.mubr.msk.f32.gmra.mrb[4].mxu0 %vm58_vm0, %v51_v11  ;;  %1500 = vmatprep.subr.bf16.mxu0 %v1499_v63  ;;  %v1578_v11 = vpack.i.bf16 %v20_v9, %v19_v8 }
  0x15   :  { %1324 = vmatprep.mubr.msk.f32.mxu0 %vm58_vm0, %v52_v12  ;;  %1486 = vmatpush3.bf16.msra.mxu1 %v1483_v22  ;;  %v1846_v12 = vld [vmem:[%s2020_s2 + $0x30] sm:$0xff] }
  0x16   :  { %1488 = vmatprep.subr.bf16.mxu1 %v1487_v25  ;;  %1579 = vrot.lane.b32.xlu1 %v1578_v11, %s1691_s29 }
  0x17   :  { %1502 = vmatpush3.bf16.msra.mxu0 %v1499_v63  ;;  %1574 = vrot.lane.b32.xlu0 %v1573_v14, %s1691_s29 }
  0x18   :  { %1325 = vmatmul.mubr.msk.f32.gmra.mrb[6].mxu0 %vm58_vm0, %v53_v13  ;;  %1504 = vmatprep.subr.bf16.mxu0 %v1503_v2  ;;  %v1851_v13 = vld [vmem:[%s2020_s2 + $0x38] sm:$0xff] }
  0x19   :  { %1490 = vmatpush3.bf16.msra.mxu1 %v1487_v25  ;;  %v1583_v16 = vpack.i.bf16 %v1851_v13, %v1846_v12 }
  0x1a   :  { %1508 = vmatprep.subr.bf16.mxu1 %v1507_v10 }
  0x1b   :  { %1506 = vmatpush3.bf16.msra.mxu0 %v1503_v2  ;;  %1584 = vrot.lane.b32.xlu1 %v1583_v16, %s1691_s29  ;;  %v1519_v2 = vpack.c.bf16 %v1851_v13, %v1846_v12 }
  0x1c   :  { %1589 = vrot.lane.b32.xlu0 %v1568_v6, %s1692_s30 }
  0x1f   :  { %1594 = vrot.lane.b32.xlu1 %v1573_v14, %s1692_s30 }
  0x20   :  { %1599 = vrot.lane.b32.xlu0 %v1578_v11, %s1692_s30 }
  0x23   :  { %1604 = vrot.lane.b32.xlu1 %v1583_v16, %s1692_s30 }
  0xdf   :  { %v1317_v34 = vpop.f32.mrb[0].mxu0 }
  0xe0   :  { %v155_v35 = vadd.f32 %v1317_v34, %v57_v33  ;;  %v149_v36 = vpop.f32.mrb[1].mxu0 }
  0xe1   :  { %v150_v37 = vadd.f32 %v149_v36, %v57_v33 }
  0xe3   :  { %1619 = vtanh.f32 %v150_v37  ;;  %v1320_v38 = vpop.f32.mrb[2].mxu0 }
  0xe4   :  { %1621 = vtanh.f32 %v155_v35  ;;  %v165_v39 = vadd.f32 %v1320_v38, %v57_v33  ;;  %v159_v40 = vpop.f32.mrb[3].mxu0 }
  0xe5   :  { %v160_v41 = vadd.f32 %v159_v40, %v57_v33  ;;  %v1570_v40 = vpop.permute.xlu0 %1569 }
  0xe7   :  { %1623 = vtanh.f32 %v160_v41  ;;  %v1323_v42 = vpop.f32.mrb[4].mxu0 }
  0xe8   :  { %1625 = vtanh.f32 %v165_v39  ;;  %v175_v43 = vadd.f32 %v1323_v42, %v57_v33  ;;  %v169_v44 = vpop.f32.mrb[5].mxu0  ;;  %v1572_v42 = vunpack.i.h.bf16 %v1570_v40 }
  0xe9   :  { %v170_v45 = vadd.f32 %v169_v44, %v57_v33  ;;  %v1580_v44 = vpop.permute.xlu1 %1579 }
  0xeb   :  { %1627 = vtanh.f32 %v170_v45  ;;  %v1326_v46 = vpop.f32.mrb[6].mxu0 }
  0xec   :  { %1629 = vtanh.f32 %v175_v43  ;;  %v185_v47 = vadd.f32 %v1326_v46, %v57_v33  ;;  %v179_v48 = vpop.f32.mrb[7].mxu0  ;;  %v1571_v43 = vunpack.i.l.bf16 %v1570_v40 }
  0xed   :  { %v1620_v49 = vpop.eup %1619  ;;  %v180_v50 = vadd.f32 %v179_v48, %v57_v33  ;;  %v1581_v48 = vunpack.i.l.bf16 %v1580_v44 }
  0xee   :  { %v1622_v51 = vpop.eup %1621  ;;  %1343 = vmatprep.mubr.msk.f32.mxu1 %vm200_vm1, %v1620_v49  ;;  %v1523_v46 = vpack.c.bf16 %v1572_v42, %v1571_v43  ;;  %v1575_v49 = vpop.permute.xlu0 %1574  ;;  %v1693_v43 = vmov 1  }
  0xef   :  { %1631 = vtanh.f32 %v180_v50  ;;  %1344 = vmatmul.mubr.msk.f32.vlgmr.msra.gmra.mrb[0].mxu1 %vm200_vm1, %v1622_v51  ;;  %v1577_v51 = vunpack.i.h.bf16 %v1575_v49  ;;  %1609 = vset.pattern.permute.xlu1 %v1693_v43 }
  0xf0   :  { %1633 = vtanh.f32 %v185_v47  ;;  %1510 = vmatpush3.bf16.msra.mxu1 %v1507_v10  ;;  %v1582_v47 = vunpack.i.h.bf16 %v1580_v44  ;;  %1524 = vmatprep.subr.bf16.mxu0 %v1523_v46  ;;  %v1694_v44 = vmov 0  }
  0xf1   :  { %v1624_v52 = vpop.eup %1623  ;;  %1512 = vmatprep.subr.bf16.mxu1 %v1511_v15  ;;  %1608 = vset.pattern.permute.xlu0 %v1694_v44 }
  0xf2   :  { %v1626_v53 = vpop.eup %1625  ;;  %1346 = vmatprep.mubr.msk.f32.mxu1 %vm200_vm1, %v1624_v52  ;;  %v1576_v52 = vunpack.i.l.bf16 %v1575_v49  ;;  %v1590_v59 = vpop.permute.xlu0 %1589 }
  0xf3   :  { %1347 = vmatmul.mubr.msk.f32.gmra.mrb[2].mxu1 %vm200_vm1, %v1626_v53  ;;  %v1585_v53 = vpop.permute.xlu1 %1584  ;;  %v1592_v63 = vunpack.i.h.bf16 %v1590_v59  ;;  %v1591_v0 = vunpack.i.l.bf16 %v1590_v59 }
  0xf4   :  { %1514 = vmatpush3.bf16.msra.mxu1 %v1511_v15  ;;  %v1586_v58 = vunpack.i.l.bf16 %v1585_v53 }
  0xf5   :  { %v1628_v54 = vpop.eup %1627  ;;  %1516 = vmatprep.subr.bf16.mxu1 %v1515_v17  ;;  %v1539_v1 = vpack.c.bf16 %v1592_v63, %v1591_v0 }
  0xf6   :  { %v1630_v55 = vpop.eup %1629  ;;  %1349 = vmatprep.mubr.msk.f32.mxu1 %vm200_vm1, %v1628_v54  ;;  %v1600_v9 = vpop.permute.xlu0 %1599 }
  0xf7   :  { %1350 = vmatmul.mubr.msk.f32.gmra.mrb[4].mxu1 %vm200_vm1, %v1630_v55  ;;  %v1527_v55 = vpack.c.bf16 %v1577_v51, %v1576_v52  ;;  %v1595_v4 = vpop.permute.xlu1 %1594  ;;  %v1602_v16 = vunpack.i.h.bf16 %v1600_v9 }
  0xf8   :  { %1518 = vmatpush3.bf16.msra.mxu1 %v1515_v17  ;;  %v1597_v6 = vunpack.i.h.bf16 %v1595_v4  ;;  %v1596_v7 = vunpack.i.l.bf16 %v1595_v4  ;;  %v1601_v17 = vunpack.i.l.bf16 %v1600_v9 }
  0xf9   :  { %v1632_v56 = vpop.eup %1631  ;;  %1520 = vmatprep.subr.bf16.mxu1 %v1519_v2 }
  0xfa   :  { %v1634_v57 = vpop.eup %1633  ;;  %1352 = vmatprep.mubr.msk.f32.mxu1 %vm200_vm1, %v1632_v56  ;;  %v1531_v56 = vpack.c.bf16 %v1582_v47, %v1581_v48  ;;  %v1543_v15 = vpack.c.bf16 %v1597_v6, %v1596_v7 }
  0xfb   :  { %1353 = vmatmul.mubr.msk.f32.gmra.mrb[6].mxu1 %vm200_vm1, %v1634_v57  ;;  %v1587_v57 = vunpack.i.h.bf16 %v1585_v53  ;;  %v1605_v12 = vpop.permute.xlu1 %1604 }
  0xfc   :  { %1522 = vmatpush3.bf16.msra.mxu1 %v1519_v2 }
  0xfd   :  { %v1535_v62 = vpack.c.bf16 %v1587_v57, %v1586_v58  ;;  %1555 = vmatprep.subr.bf16.mxu1 %v1539_v1 }
 0x1c2   :  { %v1345_v20 = vpop.f32.mrb[0].mxu1 }
 0x1c3   :  { %v297_v21 = vadd.f32 %v1345_v20, %v199_v19  ;;  %v291_v22 = vpop.f32.mrb[1].mxu1 }
 0x1c4   :  { %v292_v23 = vadd.f32 %v291_v22, %v199_v19  ;;  %v1607_v22 = vunpack.i.h.bf16 %v1605_v12 }
 0x1c6   :  { %1635 = vtanh.f32 %v292_v23  ;;  %v1348_v24 = vpop.f32.mrb[2].mxu1  ;;  %v1606_v23 = vunpack.i.l.bf16 %v1605_v12 }
 0x1c7   :  { %1637 = vtanh.f32 %v297_v21  ;;  %v307_v25 = vadd.f32 %v1348_v24, %v199_v19  ;;  %v301_v26 = vpop.f32.mrb[3].mxu1  ;;  %v1547_v21 = vpack.c.bf16 %v1602_v16, %v1601_v17 }
 0x1c8   :  { %v302_v27 = vadd.f32 %v301_v26, %v199_v19 }
 0x1ca   :  { %1639 = vtanh.f32 %v302_v27  ;;  %v1351_v28 = vpop.f32.mrb[4].mxu1 }
 0x1cb   :  { %1641 = vtanh.f32 %v307_v25  ;;  %v317_v29 = vadd.f32 %v1351_v28, %v199_v19  ;;  %v311_v31 = vpop.f32.mrb[5].mxu1  ;;  %v1551_v28 = vpack.c.bf16 %v1607_v22, %v1606_v23 }
 0x1cc   :  { %v312_v33 = vadd.f32 %v311_v31, %v199_v19 }
 0x1ce   :  { %1643 = vtanh.f32 %v312_v33  ;;  %v1354_v34 = vpop.f32.mrb[6].mxu1 }
 0x1cf   :  { %1645 = vtanh.f32 %v317_v29  ;;  %v327_v35 = vadd.f32 %v1354_v34, %v199_v19  ;;  %v321_v36 = vpop.f32.mrb[7].mxu1 }
 0x1d0   :  { %v1636_v37 = vpop.eup %1635  ;;  %v322_v38 = vadd.f32 %v321_v36, %v199_v19 }
 0x1d1   :  { %v1638_v39 = vpop.eup %1637  ;;  %1371 = vmatprep.mubr.msk.f32.mxu0 %vm200_vm1, %v1636_v37 }
 0x1d2   :  { %1647 = vtanh.f32 %v322_v38  ;;  %1372 = vmatmul.mubr.msk.f32.vlgmr.msra.gmra.mrb[8].mxu0 %vm200_vm1, %v1638_v39 }
 0x1d3   :  { %1649 = vtanh.f32 %v327_v35  ;;  %1526 = vmatpush3.bf16.msra.mxu0 %v1523_v46 }
 0x1d4   :  { %v1640_v41 = vpop.eup %1639  ;;  %1528 = vmatprep.subr.bf16.mxu0 %v1527_v55 }
 0x1d5   :  { %v1642_v45 = vpop.eup %1641  ;;  %1374 = vmatprep.mubr.msk.f32.mxu0 %vm200_vm1, %v1640_v41 }
 0x1d6   :  { %1375 = vmatmul.mubr.msk.f32.gmra.mrb[10].mxu0 %vm200_vm1, %v1642_v45  ;;  %v940_v45 = vsub.s32 3, %v1790_v30 }
 0x1d7   :  { %1530 = vmatpush3.bf16.msra.mxu0 %v1527_v55 }
 0x1d8   :  { %v1644_v50 = vpop.eup %1643  ;;  %1532 = vmatprep.subr.bf16.mxu0 %v1531_v56  ;;  %v941_v46 = vrot.slane %v1796_v32, %v940_v45 }
 0x1d9   :  { %v1646_v54 = vpop.eup %1645  ;;  %1377 = vmatprep.mubr.msk.f32.mxu0 %vm200_vm1, %v1644_v50 }
 0x1da   :  { %1378 = vmatmul.mubr.msk.f32.gmra.mrb[12].mxu0 %vm200_vm1, %v1646_v54 }
 0x1db   :  { %1534 = vmatpush3.bf16.msra.mxu0 %v1531_v56 }
 0x1dc   :  { %v1648_v60 = vpop.eup %1647  ;;  %1536 = vmatprep.subr.bf16.mxu0 %v1535_v62 }
 0x1dd   :  { %v1650_v61 = vpop.eup %1649  ;;  %1380 = vmatprep.mubr.msk.f32.mxu0 %vm200_vm1, %v1648_v60 }
 0x1de   :  { %1381 = vmatmul.mubr.msk.f32.gmra.mrb[14].mxu0 %vm200_vm1, %v1650_v61 }
 0x1df   :  { %1538 = vmatpush3.bf16.msra.mxu0 %v1535_v62 }
 0x1e0   :  { %1540 = vmatprep.subr.bf16.mxu0 %v1539_v1 }
 0x2a5   :  { %v1373_v8 = vpop.f32.mrb[8].mxu0 }
 0x2a6   :  { %v432_v10 = vpop.f32.mrb[9].mxu0  ;;  %v438_v14 = vadd.f32 %v1373_v8, %v341_v5 }
 0x2a7   :  { %v433_v11 = vadd.f32 %v432_v10, %v341_v5 }
 0x2a8   :  { %v738_v37 = vmul.f32 %v438_v14, %v438_v14 }
 0x2a9   :  { %v1376_v18 = vpop.f32.mrb[10].mxu0  ;;  %1399 = vmatprep.mubr.msk.f32.mxu1 %vm200_vm1, %v433_v11  ;;  %1427 = vmatprep.mubr.msk.f32.mxu0 %vm200_vm1, %v433_v11  ;;  %v737_v35 = vmul.f32 %v433_v11, %v433_v11 }
 0x2aa   :  { %v442_v13 = vpop.f32.mrb[11].mxu0  ;;  %1400 = vmatmul.mubr.msk.f32.vlgmr.msra.gmra.mrb[8].mxu1 %vm200_vm1, %v438_v14  ;;  %1428 = vmatmul.mubr.msk.f32.vlgmr.msra.gmra.mrb[16].mxu0 %vm200_vm1, %v438_v14  ;;  %v448_v20 = vadd.f32 %v1376_v18, %v341_v5 }
 0x2ab   :  { %v443_v19 = vadd.f32 %v442_v13, %v341_v5  ;;  %1542 = vmatpush3.bf16.msra.mxu0 %v1539_v1  ;;  %1559 = vmatpush3.bf16.msra.mxu1 %v1539_v1 }
 0x2ac   :  { %1544 = vmatprep.subr.bf16.mxu0 %v1543_v15  ;;  %1556 = vmatprep.subr.bf16.mxu1 %v1543_v15  ;;  %v740_v38 = vmul.f32 %v448_v20, %v448_v20 }
 0x2ad   :  { %v1379_v24 = vpop.f32.mrb[12].mxu0  ;;  %1402 = vmatprep.mubr.msk.f32.mxu1 %vm200_vm1, %v443_v19  ;;  %1430 = vmatprep.mubr.msk.f32.mxu0 %vm200_vm1, %v443_v19  ;;  %v739_v36 = vmul.f32 %v443_v19, %v443_v19 }
 0x2ae   :  { %v452_v25 = vpop.f32.mrb[13].mxu0  ;;  %1403 = vmatmul.mubr.msk.f32.gmra.mrb[10].mxu1 %vm200_vm1, %v448_v20  ;;  %1431 = vmatmul.mubr.msk.f32.gmra.mrb[18].mxu0 %vm200_vm1, %v448_v20  ;;  %v458_v27 = vadd.f32 %v1379_v24, %v341_v5 }
 0x2af   :  { %v453_v26 = vadd.f32 %v452_v25, %v341_v5  ;;  %1546 = vmatpush3.bf16.msra.mxu0 %v1543_v15  ;;  %1560 = vmatpush3.bf16.msra.mxu1 %v1543_v15 }
 0x2b0   :  { %1548 = vmatprep.subr.bf16.mxu0 %v1547_v21  ;;  %1557 = vmatprep.subr.bf16.mxu1 %v1547_v21  ;;  %v742_v40 = vmul.f32 %v458_v27, %v458_v27 }
 0x2b1   :  { %v1382_v29 = vpop.f32.mrb[14].mxu0  ;;  %1405 = vmatprep.mubr.msk.f32.mxu1 %vm200_vm1, %v453_v26  ;;  %1433 = vmatprep.mubr.msk.f32.mxu0 %vm200_vm1, %v453_v26  ;;  %v741_v39 = vmul.f32 %v453_v26, %v453_v26 }
 0x2b2   :  { %v462_v31 = vpop.f32.mrb[15].mxu0  ;;  %1406 = vmatmul.mubr.msk.f32.gmra.mrb[12].mxu1 %vm200_vm1, %v458_v27  ;;  %1434 = vmatmul.mubr.msk.f32.gmra.mrb[20].mxu0 %vm200_vm1, %v458_v27  ;;  %v468_v34 = vadd.f32 %v1382_v29, %v341_v5 }
 0x2b3   :  { %v463_v33 = vadd.f32 %v462_v31, %v341_v5  ;;  %1550 = vmatpush3.bf16.msra.mxu0 %v1547_v21  ;;  %1561 = vmatpush3.bf16.msra.mxu1 %v1547_v21 }
 0x2b4   :  { %1552 = vmatprep.subr.bf16.mxu0 %v1551_v28  ;;  %1558 = vmatprep.subr.bf16.mxu1 %v1551_v28  ;;  %v744_v42 = vmul.f32 %v468_v34, %v468_v34 }
 0x2b5   :  { %1408 = vmatprep.mubr.msk.f32.mxu1 %vm200_vm1, %v463_v33  ;;  %1436 = vmatprep.mubr.msk.f32.mxu0 %vm200_vm1, %v463_v33  ;;  %v743_v41 = vmul.f32 %v463_v33, %v463_v33 }
 0x2b6   :  { %1409 = vmatmul.mubr.msk.f32.gmra.mrb[14].mxu1 %vm200_vm1, %v468_v34  ;;  %1437 = vmatmul.mubr.msk.f32.gmra.mrb[22].mxu0 %vm200_vm1, %v468_v34 }
 0x2b7   :  { %1554 = vmatpush3.bf16.msra.mxu0 %v1551_v28  ;;  %1562 = vmatpush3.bf16.msra.mxu1 %v1551_v28 }
 0x2b8   :  { %1455 = vmatprep.mubr.msk.f32.mxu0 %vm200_vm1, %v737_v35  ;;  %1458 = vmatprep.mubr.msk.f32.mxu1 %vm200_vm1, %v739_v36 }
 0x2ba   :  { %1456 = vmatmul.mubr.msk.f32.vlgmr.msra.gmra.mrb[24].mxu0 %vm200_vm1, %v738_v37  ;;  %1459 = vmatmul.mubr.msk.f32.vlgmr.msra.gmra.mrb[16].mxu1 %vm200_vm1, %v740_v38 }
 0x2bb   :  { %1461 = vmatprep.mubr.msk.f32.mxu1 %vm200_vm1, %v741_v39 }
 0x2be   :  { %1462 = vmatmul.mubr.msk.f32.gmra.mrb[18].mxu1 %vm200_vm1, %v742_v40 }
 0x2bf   :  { %1464 = vmatprep.mubr.msk.f32.mxu1 %vm200_vm1, %v743_v41 }
 0x2c2   :  { %1465 = vmatmul.mubr.msk.f32.gmra.mrb[20].mxu1 %vm200_vm1, %v744_v42 }
 0x37d   :  { %v1897_v47 = vpop.f32.mrb[8].mxu1  ;;  %v1429_v48 = vpop.f32.mrb[16].mxu0 }
 0x37e   :  { %v1899_v49 = vmul.f32 %v1429_v48, %v941_v46  ;;  %v1901_v50 = vpop.f32.mrb[9].mxu1  ;;  %v698_v51 = vpop.f32.mrb[17].mxu0  ;;  %v907_v12 = vmul.f32 %v1429_v48, %v1429_v48 }
 0x37f   :  { %v1903_v52 = vmul.f32 %v941_v46, %v698_v51  ;;  %v906_v23 = vmul.f32 %v698_v51, %v698_v51 }
 0x380   :  { %v951_v53 = vsub.f32 %v1897_v47, %v1899_v49 }
 0x381   :  { %v950_v54 = vsub.f32 %v1901_v50, %v1903_v52  ;;  %v1909_v55 = vpop.f32.mrb[10].mxu1  ;;  %v1432_v56 = vpop.f32.mrb[18].mxu0 }
 0x382   :  { %v1911_v57 = vmul.f32 %v1432_v56, %v941_v46  ;;  %v1913_v58 = vpop.f32.mrb[11].mxu1  ;;  %v708_v59 = vpop.f32.mrb[19].mxu0  ;;  %v909_v13 = vmul.f32 %v1432_v56, %v1432_v56 }
 0x383   :  { %v1915_v60 = vmul.f32 %v941_v46, %v708_v59  ;;  %v908_v24 = vmul.f32 %v708_v59, %v708_v59 }
 0x384   :  { %v953_v61 = vsub.f32 %v1909_v55, %v1911_v57 }
 0x385   :  { %v952_v62 = vsub.f32 %v1913_v58, %v1915_v60  ;;  %v1921_v63 = vpop.f32.mrb[12].mxu1  ;;  %v1435_v0 = vpop.f32.mrb[20].mxu0 }
 0x386   :  { %v1923_v1 = vmul.f32 %v1435_v0, %v941_v46  ;;  %v1925_v2 = vpop.f32.mrb[13].mxu1  ;;  %v718_v3 = vpop.f32.mrb[21].mxu0  ;;  %v911_v34 = vmul.f32 %v1435_v0, %v1435_v0 }
 0x387   :  { %v1927_v4 = vmul.f32 %v941_v46, %v718_v3  ;;  %v910_v39 = vmul.f32 %v718_v3, %v718_v3 }
 0x388   :  { %v955_v5 = vsub.f32 %v1921_v63, %v1923_v1 }
 0x389   :  { %v954_v6 = vsub.f32 %v1925_v2, %v1927_v4  ;;  %v1933_v7 = vpop.f32.mrb[14].mxu1  ;;  %v1438_v8 = vpop.f32.mrb[22].mxu0 }
 0x38a   :  { %v1935_v9 = vmul.f32 %v1438_v8, %v941_v46  ;;  %v1937_v10 = vpop.f32.mrb[15].mxu1  ;;  %v728_v11 = vpop.f32.mrb[23].mxu0  ;;  %v913_v51 = vmul.f32 %v1438_v8, %v1438_v8 }
 0x38b   :  { %v1939_v14 = vmul.f32 %v941_v46, %v728_v11 }
 0x38c   :  { %v957_v15 = vsub.f32 %v1933_v7, %v1935_v9 }
 0x38d   :  { %v956_v16 = vsub.f32 %v1937_v10, %v1939_v14  ;;  %v1457_v17 = vpop.f32.mrb[24].mxu0  ;;  %v1460_v18 = vpop.f32.mrb[16].mxu1 }
 0x38e   :  { %v899_v19 = vmul.f32 0.03125, %v1457_v17  ;;  %v901_v20 = vmul.f32 0.03125, %v1460_v18  ;;  %v859_v21 = vpop.f32.mrb[25].mxu0  ;;  %v869_v22 = vpop.f32.mrb[17].mxu1  ;;  %v912_v18 = vmul.f32 %v728_v11, %v728_v11 }
 0x38f   :  { %v898_v25 = vmul.f32 0.03125, %v859_v21  ;;  %v900_v26 = vmul.f32 0.03125, %v869_v22 }
 0x390   :  { %v915_v27 = vsub.f32 %v899_v19, %v907_v12  ;;  %v917_v28 = vsub.f32 %v901_v20, %v909_v13 }
 0x391   :  { %v914_v29 = vsub.f32 %v898_v25, %v906_v23  ;;  %v916_v31 = vsub.f32 %v900_v26, %v908_v24  ;;  %v1463_v33 = vpop.f32.mrb[18].mxu1 }
 0x392   :  { %v923_v35 = vadd.f32 1e-06, %v915_v27  ;;  %v925_v36 = vadd.f32 1e-06, %v917_v28  ;;  %v903_v37 = vmul.f32 0.03125, %v1463_v33  ;;  %v879_v38 = vpop.f32.mrb[19].mxu1 }
 0x393   :  { %v922_v40 = vadd.f32 1e-06, %v914_v29  ;;  %v924_v41 = vadd.f32 1e-06, %v916_v31  ;;  %v902_v42 = vmul.f32 0.03125, %v879_v38 }
 0x394   :  { %1651 = vrsqrt.f32 %v923_v35  ;;  %v919_v45 = vsub.f32 %v903_v37, %v911_v34 }
 0x395   :  { %1653 = vrsqrt.f32 %v925_v36  ;;  %v918_v46 = vsub.f32 %v902_v42, %v910_v39  ;;  %v1466_v48 = vpop.f32.mrb[20].mxu1 }
 0x396   :  { %1655 = vrsqrt.f32 %v922_v40  ;;  %v927_v56 = vadd.f32 1e-06, %v919_v45  ;;  %v905_v59 = vmul.f32 0.03125, %v1466_v48  ;;  %v889_v17 = vpop.f32.mrb[21].mxu1 }
 0x397   :  { %1657 = vrsqrt.f32 %v924_v41  ;;  %v926_v0 = vadd.f32 1e-06, %v918_v46  ;;  %v904_v12 = vmul.f32 0.03125, %v889_v17 }
 0x398   :  { %1659 = vrsqrt.f32 %v927_v56  ;;  %v921_v13 = vsub.f32 %v905_v59, %v913_v51 }
 0x399   :  { %1661 = vrsqrt.f32 %v926_v0  ;;  %v920_v3 = vsub.f32 %v904_v12, %v912_v18 }
 0x39a   :  { %v929_v19 = vadd.f32 1e-06, %v921_v13 }
 0x39b   :  { %v928_v20 = vadd.f32 1e-06, %v920_v3 }
 0x39c   :  { %1663 = vrsqrt.f32 %v929_v19 }
 0x39d   :  { %1665 = vrsqrt.f32 %v928_v20 }
 0x39e   :  { %v1652_v21 = vpop.eup %1651 }
 0x39f   :  { %v1654_v22 = vpop.eup %1653  ;;  %v959_v8 = vmul.f32 %v1652_v21, %v951_v53 }
 0x3a0   :  { %v1656_v23 = vpop.eup %1655  ;;  %v961_v11 = vmul.f32 %v1654_v22, %v953_v61  ;;  %v1981_v61 = vld [vmem:[%s2020_s2 + $0x50] sm:$0xff] }
 0x3a1   :  { %v1658_v24 = vpop.eup %1657  ;;  %1019 = vperm.xlu1 %1609, %v959_v8   ;;  %973 = vperm.xlu0 %1608, %v959_v8   ;;  %v958_v25 = vmul.f32 %v1656_v23, %v950_v54 }
 0x3a2   :  { %v1660_v26 = vpop.eup %1659  ;;  %v960_v27 = vmul.f32 %v1658_v24, %v952_v62  ;;  %v1986_v62 = vld [vmem:[%s2020_s2 + $0x48] sm:$0xff]  ;;  %s1695_s2 = smov [#allocation2]  }
 0x3a3   :  { %v1662_v28 = vpop.eup %1661  ;;  %v963_v47 = vmul.f32 %v1660_v26, %v955_v5  ;;  %s1159_s8 = sshll.u32 %s1695_s2, 4  ;;  %s1160_s8 = int_to_ptr.vmem [resolvable:$true] %s1159_s8 }
 0x3a4   :  { %v962_v49 = vmul.f32 %v1662_v28, %v954_v6  ;;  %s1667_s9 = scalar_lea.vmem %s1160_s8, 128  ;;  %p1672_p1 = scmp.lt.s32.totalorder %s1160_s8, %s1160_s8 }
 0x3a5   :  { %1610 = vset.pattern.permute.xlu1 %v1694_v44  ;;  %1613 = vset.pattern.permute.xlu0 %v1693_v43  ;;  %p1668_p0 = scmp.ne.s32.totalorder %s1160_s8, %s1667_s9  ;;  %p1673_p2 = scmp.lt.s32.totalorder %s1667_s9, %s1667_s9 }
 0x3a6   :  { %v1664_v50 = vpop.eup %1663  ;;  %983 = vperm.xlu1 %1610, %v961_v11   ;;  %1023 = vperm.xlu0 %1613, %v960_v27  }
 0x3a7   :  { %v1666_v52 = vpop.eup %1665  ;;  %v965_v53 = vmul.f32 %v1664_v50, %v957_v15  ;;  %p1674_p3 = por %p1673_p2, %p1672_p1 }
 0x3a8   :  { %v964_v54 = vmul.f32 %v1666_v52, %v956_v16 }
 0x3a9   :  { %p1675_p4 = pnand %p1674_p3, %p1668_p0 }
 0x3aa   :  { %1611 = vset.pattern.permute.xlu1 %v1693_v43  ;;  %1015 = vperm.xlu0 %1613, %v958_v25  }
 0x3ab   :  { %1027 = vperm.xlu1 %1611, %v961_v11  }
 0x3ae   :  { %1035 = vperm.xlu0 %1613, %v963_v47  }
 0x3af   :  { %1612 = vset.pattern.permute.xlu1 %v1694_v44 }
 0x3b0   :  { %978 = vperm.xlu1 %1612, %v960_v27  }
 0x3b2   :  { %1614 = vset.pattern.permute.xlu0 %v1694_v44 }
 0x3b3   :  { %988 = vperm.xlu0 %1614, %v962_v49  }
 0x3b4   :  { %968 = vperm.xlu1 %1612, %v958_v25   ;;  %v1112_v25 = vsub.s32 4, %v1790_v30 }
 0x3b7   :  { %1003 = vperm.xlu0 %1614, %v965_v53  }
 0x3b8   :  { %993 = vperm.xlu1 %1612, %v963_v47  }
 0x3bb   :  { %1618 = vset.pattern.permute.xlu0 %v1693_v43 }
 0x3bc   :  { %1615 = vset.pattern.permute.xlu1 %v1693_v43 }
 0x3bd   :  { %1031 = vperm.xlu1 %1615, %v962_v49  }
 0x3c1   :  { %1616 = vset.pattern.permute.xlu1 %v1694_v44 }
 0x3c2   :  { %998 = vperm.xlu1 %1616, %v964_v54  }
 0x3c6   :  { %1617 = vset.pattern.permute.xlu1 %v1693_v43 }
 0x3c7   :  { %1039 = vperm.xlu1 %1617, %v964_v54  }
 0x3cb   :  { %1043 = vperm.xlu1 %1617, %v965_v53  }
 0x420   :  { %v1020_v55 = vpop.permute.xlu1 %1019  ;;  %v974_v57 = vpop.permute.xlu0 %973 }
 0x421   :  { %v1047_v63 = vmul.f32 %v1020_v55, %v1981_v61  ;;  %v1007_v43 = vmul.f32 %v974_v57, %v1986_v62 }
 0x423   :  { %v1055_v5 = vadd.f32 %v1047_v63, %v1007_v43 }
 0x425   :  { %v984_v58 = vpop.permute.xlu1 %983  ;;  %v1024_v60 = vpop.permute.xlu0 %1023  ;;  %v1068_v31 = vrot.slane %v1055_v5, 4 }
 0x426   :  { %v1048_v6 = vmul.f32 %v1024_v60, %v1981_v61  ;;  %v1009_v10 = vmul.f32 %v984_v58, %v1986_v62  ;;  %v1113_v58 = vrot.slane %v1796_v32, %v1112_v25 }
 0x427   :  { %v1069_v39 = vadd.f32 %v1068_v31, %v1055_v5 }
 0x429   :  { %v1016_v1 = vpop.permute.xlu0 %1015  ;;  %v1070_v56 = vrot.slane %v1069_v39, 2 }
 0x42a   :  { %v1028_v44 = vpop.permute.xlu1 %1027  ;;  %v1046_v14 = vmul.f32 %v1016_v1, %v1981_v61 }
 0x42b   :  { %v1049_v7 = vmul.f32 %v1028_v44, %v1981_v61  ;;  %v1071_v19 = vadd.f32 %v1070_v56, %v1069_v39 }
 0x42d   :  { %v1036_v15 = vpop.permute.xlu0 %1035  ;;  %v1057_v33 = vadd.f32 %v1049_v7, %v1009_v10  ;;  %v1072_v26 = vrot.slane %v1071_v19, 1 }
 0x42e   :  { %v1051_v40 = vmul.f32 %v1036_v15, %v1981_v61 }
 0x42f   :  { %v979_v2 = vpop.permute.xlu1 %978  ;;  %v1080_v41 = vrot.slane %v1057_v33, 4  ;;  %v1073_v60 = vadd.f32 %v1072_v26, %v1071_v19 }
 0x430   :  { %v1008_v4 = vmul.f32 %v979_v2, %v1986_v62 }
 0x431   :  { %v1081_v18 = vadd.f32 %v1080_v41, %v1057_v33 }
 0x432   :  { %v1056_v16 = vadd.f32 %v1048_v6, %v1008_v4  ;;  %v989_v42 = vpop.permute.xlu0 %988 }
 0x433   :  { %v969_v9 = vpop.permute.xlu1 %968  ;;  %v1010_v59 = vmul.f32 %v989_v42, %v1986_v62  ;;  %v1082_v22 = vrot.slane %v1081_v18, 2 }
 0x434   :  { %v1006_v29 = vmul.f32 %v969_v9, %v1986_v62  ;;  %v1074_v36 = vrot.slane %v1056_v16, 4  ;;  %v1115_v9 = vadd.f32 %v1113_v58, %v1073_v60 }
 0x435   :  { %v1083_v28 = vadd.f32 %v1082_v22, %v1081_v18 }
 0x436   :  { %v1054_v34 = vadd.f32 %v1046_v14, %v1006_v29  ;;  %v1075_v48 = vadd.f32 %v1074_v36, %v1056_v16  ;;  %v1004_v50 = vpop.permute.xlu0 %1003 }
 0x437   :  { %v994_v35 = vpop.permute.xlu1 %993  ;;  %v1084_v63 = vrot.slane %v1083_v28, 1  ;;  %v1013_v30 = vmul.f32 %v1004_v50, %v1986_v62 }
 0x438   :  { %v1062_v37 = vrot.slane %v1054_v34, 4  ;;  %v1011_v38 = vmul.f32 %v994_v35, %v1986_v62  ;;  %v1076_v3 = vrot.slane %v1075_v48, 2 }
 0x439   :  { %v1085_v15 = vadd.f32 %v1084_v63, %v1083_v28 }
 0x43a   :  { %v1063_v45 = vadd.f32 %v1062_v37, %v1054_v34  ;;  %v1059_v46 = vadd.f32 %v1051_v40, %v1011_v38  ;;  %v1077_v24 = vadd.f32 %v1076_v3, %v1075_v48 }
 0x43b   :  { %v1117_v37 = vadd.f32 %v1113_v58, %v1085_v15 }
 0x43c   :  { %v1032_v51 = vpop.permute.xlu1 %1031  ;;  %v1064_v0 = vrot.slane %v1063_v45, 2  ;;  %v1092_v12 = vrot.slane %v1059_v46, 4  ;;  %v1078_v57 = vrot.slane %v1077_v24, 1 }
 0x43d   :  { %v1050_v17 = vmul.f32 %v1032_v51, %v1981_v61  ;;  %v1136_v56 = vrot.slane %v1117_v37, 5 }
 0x43e   :  { %v1065_v8 = vadd.f32 %v1064_v0, %v1063_v45  ;;  %v1093_v23 = vadd.f32 %v1092_v12, %v1059_v46  ;;  %v1079_v7 = vadd.f32 %v1078_v57, %v1077_v24 }
 0x43f   :  { %v1058_v13 = vadd.f32 %v1050_v17, %v1010_v59 }
 0x440   :  { %v1066_v47 = vrot.slane %v1065_v8, 1  ;;  %v1094_v52 = vrot.slane %v1093_v23, 2  ;;  %v1116_v34 = vadd.f32 %v1113_v58, %v1079_v7 }
 0x441   :  { %v1086_v20 = vrot.slane %v1058_v13, 4  ;;  %v999_v21 = vpop.permute.xlu1 %998 }
 0x442   :  { %v1012_v54 = vmul.f32 %v999_v21, %v1986_v62  ;;  %v1067_v2 = vadd.f32 %v1066_v47, %v1065_v8  ;;  %v1095_v4 = vadd.f32 %v1094_v52, %v1093_v23  ;;  %v1130_v62 = vrot.slane %v1115_v9, 7 }
 0x443   :  { %v1087_v11 = vadd.f32 %v1086_v20, %v1058_v13  ;;  %v1133_v42 = vrot.slane %v1116_v34, 6 }
 0x444   :  { %v1114_v29 = vadd.f32 %v1113_v58, %v1067_v2  ;;  %v1096_v32 = vrot.slane %v1095_v4, 1 }
 0x445   :  { %v1088_v27 = vrot.slane %v1087_v11, 2 }
 0x446   :  { %v1040_v49 = vpop.permute.xlu1 %1039  ;;  %v1132_v39 = vsel %vm1131_vm2, %v1130_v62, %v1114_v29 }
 0x447   :  { %v1089_v53 = vadd.f32 %v1088_v27, %v1087_v11  ;;  %v1052_v55 = vmul.f32 %v1040_v49, %v1981_v61  ;;  %v1135_v51 = vsel %vm1134_vm3, %v1133_v42, %v1132_v39 }
 0x448   :  { %v1138_v12 = vsel %vm1137_vm4, %v1136_v56, %v1135_v51 }
 0x449   :  { %v1060_v44 = vadd.f32 %v1052_v55, %v1012_v54  ;;  %v1090_v43 = vrot.slane %v1089_v53, 1 }
 0x44a   :  { %v1044_v1 = vpop.permute.xlu1 %1043 }
 0x44b   :  { %v1098_v5 = vrot.slane %v1060_v44, 4  ;;  %v1053_v6 = vmul.f32 %v1044_v1, %v1981_v61  ;;  %v1091_v16 = vadd.f32 %v1090_v43, %v1089_v53  ;;  %v1097_v61 = vadd.f32 %v1096_v32, %v1095_v4 }
 0x44d   :  { %v1099_v10 = vadd.f32 %v1098_v5, %v1060_v44  ;;  %v1061_v14 = vadd.f32 %v1053_v6, %v1013_v30  ;;  %v1118_v38 = vadd.f32 %v1113_v58, %v1091_v16  ;;  %v1119_v59 = vadd.f32 %v1113_v58, %v1097_v61 }
 0x44f   :  { %v1100_v31 = vrot.slane %v1099_v10, 2  ;;  %v1104_v33 = vrot.slane %v1061_v14, 4  ;;  %v1139_v48 = vrot.slane %v1118_v38, 4  ;;  %v1142_v20 = vrot.slane %v1119_v59, 3 }
 0x451   :  { %v1101_v35 = vadd.f32 %v1100_v31, %v1099_v10  ;;  %v1105_v36 = vadd.f32 %v1104_v33, %v1061_v14  ;;  %v1141_v13 = vsel %vm1140_vm5, %v1139_v48, %v1138_v12 }
 0x452   :  { %v1144_v21 = vsel %vm1143_vm6, %v1142_v20, %v1141_v13 }
 0x453   :  { %v1102_v40 = vrot.slane %v1101_v35, 1  ;;  %v1106_v41 = vrot.slane %v1105_v36, 2 }
 0x455   :  { %v1103_v45 = vadd.f32 %v1102_v40, %v1101_v35  ;;  %v1107_v46 = vadd.f32 %v1106_v41, %v1105_v36 }
 0x457   :  { %v1108_v17 = vrot.slane %v1107_v46, 1  ;;  %v1120_v18 = vadd.f32 %v1113_v58, %v1103_v45 }
 0x459   :  { %v1109_v0 = vadd.f32 %v1108_v17, %v1107_v46  ;;  %v1145_v3 = vrot.slane %v1120_v18, 2 }
 0x45b   :  { %v1121_v19 = vadd.f32 %v1113_v58, %v1109_v0  ;;  %v1147_v8 = vsel %vm1146_vm7, %v1145_v3, %v1144_v21 }
 0x45d   :  { %v1148_v22 = vrot.slane %v1121_v19, 1 }
 0x45f   :  { %v1150_v23 = vsel %vm1149_vm8, %v1148_v22, %v1147_v8 }
 0x460   :  { %1152 = vst [vmem:[#allocation2] sm:$0xff] %v1150_v23 }
 0x461   :  { %1678 = shalt.err (!%p1675_p4)
}
 0x462   :  { %s1679_s12 = scalar_lea.hbm %s2021_s3, 128 }
 0x463   :  { %p1680_p5 = scmp.ne.s32.totalorder %s2021_s3, %s1679_s12  ;;  %p1683_p6 = scmp.lt.u32.totalorder %s1679_s12, %s2021_s3 }
 0x465   :  { %p1685_p7 = pnand %p1683_p6, %p1680_p5 }
 0x467   :  { %1688 = shalt.err (!%p1685_p7)
}
 0x468   :  { %1162 = dma.vmem_to_hbm [thread:$0]  %s1160_s8, 128, %s2021_s3, [#allocation3]  }
 0x469   :  { %1689 = dma.done.wait [#allocation3], 128  }
 0x46a   :  { %1690 = vsyncadd [#allocation3], 4294967168 }
 0x46b   :  { %1166 = vsyncpa [#allocation3], 1 }

</bundles_post_ra>
